<compile_context>
chip_gen: v7x
topology: tpu7x:2x2x1
jax: 0.10.0
libtpu: 0.0.40
codegen_flags: <defaults>
</compile_context>

<pallas_src>
import functools

import jax
import jax.numpy as jnp
from jax.experimental import pallas as pl
from jax.experimental.pallas import tpu as pltpu


LANE = 128                      # lane width / Cout padding granularity
MAX_TM = 512                    # max patch-rows per GEMM tile
VMEM_LIMIT_BYTES = 32 * 1024 * 1024   # safe on v5e/v6e (128 MiB phys) and v7x (64 MiB phys)


def _round_up(x, m):
    return ((x + m - 1) // m) * m


def _choose_tile(M):
    """Pick an M tile: multiple of 16 (bf16 sublane packing), <= MAX_TM, low padding."""
    Ma = _round_up(M, 16)
    if Ma <= MAX_TM:
        return Ma
    ntiles = -(-Ma // MAX_TM)
    return _round_up(-(-Ma // ntiles), 16)


# ----------------------------------------------------------------------------------
# Pallas kernels
# ----------------------------------------------------------------------------------

def _matmul_bn_relu_kernel(p_ref, w_ref, scale_ref, shift_ref, o_ref):
    """Fused (bf16 patches @ bf16 weight) in f32, * bn_scale + bn_shift, ReLU."""
    acc = jnp.dot(p_ref[...], w_ref[...], preferred_element_type=jnp.float32)
    o_ref[...] = jnp.maximum(acc * scale_ref[...] + shift_ref[...], 0.0)


@functools.lru_cache(maxsize=None)
def _conv_matmul_call(Mp, K, Np, tm):
    """M-tiled fused matmul+BN+ReLU pallas_call, cached by (padded) shape."""
    grid = (Mp // tm,)
    flops = 2 * Mp * K * Np
    bytes_accessed = Mp * K * 2 + K * Np * 2 + 2 * Np * 4 + Mp * Np * 4
    call = pl.pallas_call(
        _matmul_bn_relu_kernel,
        out_shape=jax.ShapeDtypeStruct((Mp, Np), jnp.float32),
        grid=grid,
        in_specs=[
            pl.BlockSpec((tm, K), lambda i: (i, 0)),    # patch tile (streamed / pipelined)
            pl.BlockSpec((K, Np), lambda i: (0, 0)),    # weight  (VMEM-resident)
            pl.BlockSpec((1, Np), lambda i: (0, 0)),    # bn scale (resident)
            pl.BlockSpec((1, Np), lambda i: (0, 0)),    # bn shift (resident)
        ],
        out_specs=pl.BlockSpec((tm, Np), lambda i: (i, 0)),
        compiler_params=pltpu.CompilerParams(
            dimension_semantics=("parallel",),
            vmem_limit_bytes=VMEM_LIMIT_BYTES,
        ),
        cost_estimate=pl.CostEstimate(
            flops=flops, transcendentals=0, bytes_accessed=bytes_accessed),
    )
    return jax.jit(call)


def _pool_kernel_factory(KH, KW, Ho, Wo, sh, sw, op):
    """Strided 'valid' pooling over a pre-padded NHWC tile (one batch element)."""
    inv = 1.0 / float(KH * KW)

    def _win(x_ref, kh, kw):
        hs = pl.ds(kh, Ho) if (sh == 1 or Ho == 1) else pl.ds(kh, Ho, sh)
        ws = pl.ds(kw, Wo) if (sw == 1 or Wo == 1) else pl.ds(kw, Wo, sw)
        return x_ref[:, hs, ws, :]

    def kernel(x_ref, o_ref):
        acc = _win(x_ref, 0, 0)
        for kh in range(KH):
            for kw in range(KW):
                if kh == 0 and kw == 0:
                    continue
                xs = _win(x_ref, kh, kw)
                acc = jnp.maximum(acc, xs) if op == "max" else acc + xs
        if op == "avg":        # count_include_pad=True semantics
            acc = acc * inv
        o_ref[...] = acc
    return kernel


@functools.lru_cache(maxsize=None)
def _pool_call(N, Hp, Wp, C, k, stride, op):
    Ho = (Hp - k) // stride + 1
    Wo = (Wp - k) // stride + 1
    kernel = _pool_kernel_factory(k, k, Ho, Wo, stride, stride, op)
    call = pl.pallas_call(
        kernel,
        out_shape=jax.ShapeDtypeStruct((N, Ho, Wo, C), jnp.float32),
        grid=(N,),
        in_specs=[pl.BlockSpec((1, Hp, Wp, C), lambda n: (n, 0, 0, 0))],
        out_specs=pl.BlockSpec((1, Ho, Wo, C), lambda n: (n, 0, 0, 0)),
        compiler_params=pltpu.CompilerParams(
            dimension_semantics=("parallel",),
            vmem_limit_bytes=VMEM_LIMIT_BYTES),
    )
    return jax.jit(call)


def _gap_kernel(x_ref, o_ref):
    """Adaptive average pool to (1,1): mean over H, W."""
    o_ref[...] = jnp.mean(x_ref[...], axis=(1, 2), keepdims=True)


@functools.lru_cache(maxsize=None)
def _gap_call(N, H, W, C):
    call = pl.pallas_call(
        _gap_kernel,
        out_shape=jax.ShapeDtypeStruct((N, 1, 1, C), jnp.float32),
        grid=(N,),
        in_specs=[pl.BlockSpec((1, H, W, C), lambda n: (n, 0, 0, 0))],
        out_specs=pl.BlockSpec((1, 1, 1, C), lambda n: (n, 0, 0, 0)),
        compiler_params=pltpu.CompilerParams(
            dimension_semantics=("parallel",),
            vmem_limit_bytes=VMEM_LIMIT_BYTES),
    )
    return jax.jit(call)


# ----------------------------------------------------------------------------------
# Glue ops (layout / padding / strided im2col); hot path stays in the kernels above
# ----------------------------------------------------------------------------------

def conv_bn_relu(x, prm, stride=1, padding=(0, 0)):
    """BasicConv2d: conv(bias=False) + BN(eval, eps=1e-3) + ReLU.  x is NHWC f32."""
    KH, KW, Cin, Cout = prm["kh"], prm["kw"], prm["cin"], prm["cout"]
    w2, scale, shift = prm["w2"], prm["scale"], prm["shift"]
    Np = w2.shape[1]

    ph, pw = padding
    x = x.astype(jnp.bfloat16)                     # MXU-native input / half the im2col bytes
    if ph or pw:
        x = jnp.pad(x, ((0, 0), (ph, ph), (pw, pw), (0, 0)))
    Nb, Hp, Wp, _ = x.shape
    Ho = (Hp - KH) // stride + 1
    Wo = (Wp - KW) // stride + 1

    # strided im2col: only the windows at the output stride are gathered.
    # K-axis ordering is (kh, kw, cin), matching w.reshape(K, Cout) in init.
    if KH == 1 and KW == 1:
        patches = x if stride == 1 else x[:, ::stride, ::stride, :]
    else:
        taps = []
        for kh in range(KH):
            for kw in range(KW):
                taps.append(x[:, kh:kh + (Ho - 1) * stride + 1:stride,
                                 kw:kw + (Wo - 1) * stride + 1:stride, :])
        patches = jnp.concatenate(taps, axis=-1)

    M = Nb * Ho * Wo
    K = KH * KW * Cin
    p2 = patches.reshape(M, K)

    tm = _choose_tile(M)
    Mp = _round_up(M, tm)
    if Mp != M:
        p2 = jnp.pad(p2, ((0, Mp - M), (0, 0)))    # aligned tiles, no ragged epilogue

    y = _conv_matmul_call(Mp, K, Np, tm)(p2, w2, scale, shift)
    return y[:M, :Cout].reshape(Nb, Ho, Wo, Cout)


def pool2d(x, k, stride, pad, op):
    """max / avg pool (PyTorch semantics; avg uses count_include_pad=True)."""
    if pad:
        cval = -jnp.inf if op == "max" else 0.0
        x = jnp.pad(x, ((0, 0), (pad, pad), (pad, pad), (0, 0)), constant_values=cval)
    Nb, Hp, Wp, C = x.shape
    return _pool_call(Nb, Hp, Wp, C, k, stride, op)(x)


# ----------------------------------------------------------------------------------
# Deterministic synthetic parameters (Inception v3 backbone)
# ----------------------------------------------------------------------------------

class KeyGen:
    def __init__(self, key):
        self.key, self.i = key, 0

    def __call__(self):
        self.i += 1
        return jax.random.fold_in(self.key, self.i)


def init_conv_params(key, cin, cout, kh, kw):
    k1, k2, k3, k4, k5 = jax.random.split(key, 5)
    fan_in = kh * kw * cin
    w = jax.random.normal(k1, (kh, kw, cin, cout), jnp.float32) * jnp.sqrt(2.0 / fan_in)
    gamma = 1.0 + 0.1 * jax.random.normal(k2, (cout,), jnp.float32)
    beta = 0.1 * jax.random.normal(k3, (cout,), jnp.float32)
    r_mean = 0.1 * jax.random.normal(k4, (cout,), jnp.float32)
    r_var = jax.random.uniform(k5, (cout,), jnp.float32, 0.5, 1.5)
    eps = 1e-3  # torchvision BasicConv2d: BatchNorm2d(eps=0.001)
    scale = gamma / jnp.sqrt(r_var + eps)
    shift = beta - r_mean * scale

    # Pre-pack for the GEMM kernel: bf16 weight (K, Npad), f32 scale/shift (1, Npad),
    # with Cout padded to a multiple of 128 for lane-dense (unmasked) stores.
    K = kh * kw * cin
    Np = _round_up(cout, LANE)
    w2 = jnp.pad(w.reshape(K, cout).astype(jnp.bfloat16), ((0, 0), (0, Np - cout)))
    scale = jnp.pad(scale, (0, Np - cout)).reshape(1, Np)
    shift = jnp.pad(shift, (0, Np - cout)).reshape(1, Np)
    return {"w2": w2, "scale": scale, "shift": shift,
            "kh": kh, "kw": kw, "cin": cin, "cout": cout}


def build_params(key):
    kg = KeyGen(key)
    P = {}

    def bc(name, cin, cout, kh, kw):
        P[name] = init_conv_params(kg(), cin, cout, kh, kw)

    # stem
    bc("Conv2d_1a_3x3", 3, 32, 3, 3)
    bc("Conv2d_2a_3x3", 32, 32, 3, 3)
    bc("Conv2d_2b_3x3", 32, 64, 3, 3)
    bc("Conv2d_3b_1x1", 64, 80, 1, 1)
    bc("Conv2d_4a_3x3", 80, 192, 3, 3)

    def inception_a(pfx, cin, pool_features):
        bc(pfx + ".branch1x1", cin, 64, 1, 1)
        bc(pfx + ".branch5x5_1", cin, 48, 1, 1)
        bc(pfx + ".branch5x5_2", 48, 64, 5, 5)
        bc(pfx + ".branch3x3dbl_1", cin, 64, 1, 1)
        bc(pfx + ".branch3x3dbl_2", 64, 96, 3, 3)
        bc(pfx + ".branch3x3dbl_3", 96, 96, 3, 3)
        bc(pfx + ".branch_pool", cin, pool_features, 1, 1)

    inception_a("Mixed_5b", 192, 32)
    inception_a("Mixed_5c", 256, 64)
    inception_a("Mixed_5d", 288, 64)

    # InceptionB
    bc("Mixed_6a.branch3x3", 288, 384, 3, 3)
    bc("Mixed_6a.branch3x3dbl_1", 288, 64, 1, 1)
    bc("Mixed_6a.branch3x3dbl_2", 64, 96, 3, 3)
    bc("Mixed_6a.branch3x3dbl_3", 96, 96, 3, 3)

    def inception_c(pfx, cin, c7):
        bc(pfx + ".branch1x1", cin, 192, 1, 1)
        bc(pfx + ".branch7x7_1", cin, c7, 1, 1)
        bc(pfx + ".branch7x7_2", c7, c7, 1, 7)
        bc(pfx + ".branch7x7_3", c7, 192, 7, 1)
        bc(pfx + ".branch7x7dbl_1", cin, c7, 1, 1)
        bc(pfx + ".branch7x7dbl_2", c7, c7, 7, 1)
        bc(pfx + ".branch7x7dbl_3", c7, c7, 1, 7)
        bc(pfx + ".branch7x7dbl_4", c7, c7, 7, 1)
        bc(pfx + ".branch7x7dbl_5", c7, 192, 1, 7)
        bc(pfx + ".branch_pool", cin, 192, 1, 1)

    inception_c("Mixed_6b", 768, 128)
    inception_c("Mixed_6c", 768, 160)
    inception_c("Mixed_6d", 768, 160)
    inception_c("Mixed_6e", 768, 192)

    # InceptionD
    bc("Mixed_7a.branch3x3_1", 768, 192, 1, 1)
    bc("Mixed_7a.branch3x3_2", 192, 320, 3, 3)
    bc("Mixed_7a.branch7x7x3_1", 768, 192, 1, 1)
    bc("Mixed_7a.branch7x7x3_2", 192, 192, 1, 7)
    bc("Mixed_7a.branch7x7x3_3", 192, 192, 7, 1)
    bc("Mixed_7a.branch7x7x3_4", 192, 192, 3, 3)

    def inception_e(pfx, cin):
        bc(pfx + ".branch1x1", cin, 320, 1, 1)
        bc(pfx + ".branch3x3_1", cin, 384, 1, 1)
        bc(pfx + ".branch3x3_2a", 384, 384, 1, 3)
        bc(pfx + ".branch3x3_2b", 384, 384, 3, 1)
        bc(pfx + ".branch3x3dbl_1", cin, 448, 1, 1)
        bc(pfx + ".branch3x3dbl_2", 448, 384, 3, 3)
        bc(pfx + ".branch3x3dbl_3a", 384, 384, 1, 3)
        bc(pfx + ".branch3x3dbl_3b", 384, 384, 3, 1)
        bc(pfx + ".branch_pool", cin, 192, 1, 1)

    inception_e("Mixed_7b", 1280)
    inception_e("Mixed_7c", 2048)
    return P


# ----------------------------------------------------------------------------------
# Inception blocks (forward)
# ----------------------------------------------------------------------------------

def inception_a_fwd(P, pfx, x):
    b1 = conv_bn_relu(x, P[pfx + ".branch1x1"])
    b5 = conv_bn_relu(x, P[pfx + ".branch5x5_1"])
    b5 = conv_bn_relu(b5, P[pfx + ".branch5x5_2"], padding=(2, 2))
    b3 = conv_bn_relu(x, P[pfx + ".branch3x3dbl_1"])
    b3 = conv_bn_relu(b3, P[pfx + ".branch3x3dbl_2"], padding=(1, 1))
    b3 = conv_bn_relu(b3, P[pfx + ".branch3x3dbl_3"], padding=(1, 1))
    bp = pool2d(x, 3, 1, 1, "avg")
    bp = conv_bn_relu(bp, P[pfx + ".branch_pool"])
    return jnp.concatenate([b1, b5, b3, bp], axis=-1)


def inception_b_fwd(P, x):
    b3 = conv_bn_relu(x, P["Mixed_6a.branch3x3"], stride=2)
    bd = conv_bn_relu(x, P["Mixed_6a.branch3x3dbl_1"])
    bd = conv_bn_relu(bd, P["Mixed_6a.branch3x3dbl_2"], padding=(1, 1))
    bd = conv_bn_relu(bd, P["Mixed_6a.branch3x3dbl_3"], stride=2)
    bp = pool2d(x, 3, 2, 0, "max")
    return jnp.concatenate([b3, bd, bp], axis=-1)


def inception_c_fwd(P, pfx, x):
    b1 = conv_bn_relu(x, P[pfx + ".branch1x1"])
    b7 = conv_bn_relu(x, P[pfx + ".branch7x7_1"])
    b7 = conv_bn_relu(b7, P[pfx + ".branch7x7_2"], padding=(0, 3))
    b7 = conv_bn_relu(b7, P[pfx + ".branch7x7_3"], padding=(3, 0))
    bd = conv_bn_relu(x, P[pfx + ".branch7x7dbl_1"])
    bd = conv_bn_relu(bd, P[pfx + ".branch7x7dbl_2"], padding=(3, 0))
    bd = conv_bn_relu(bd, P[pfx + ".branch7x7dbl_3"], padding=(0, 3))
    bd = conv_bn_relu(bd, P[pfx + ".branch7x7dbl_4"], padding=(3, 0))
    bd = conv_bn_relu(bd, P[pfx + ".branch7x7dbl_5"], padding=(0, 3))
    bp = pool2d(x, 3, 1, 1, "avg")
    bp = conv_bn_relu(bp, P[pfx + ".branch_pool"])
    return jnp.concatenate([b1, b7, bd, bp], axis=-1)


def inception_d_fwd(P, x):
    b3 = conv_bn_relu(x, P["Mixed_7a.branch3x3_1"])
    b3 = conv_bn_relu(b3, P["Mixed_7a.branch3x3_2"], stride=2)
    b7 = conv_bn_relu(x, P["Mixed_7a.branch7x7x3_1"])
    b7 = conv_bn_relu(b7, P["Mixed_7a.branch7x7x3_2"], padding=(0, 3))
    b7 = conv_bn_relu(b7, P["Mixed_7a.branch7x7x3_3"], padding=(3, 0))
    b7 = conv_bn_relu(b7, P["Mixed_7a.branch7x7x3_4"], stride=2)
    bp = pool2d(x, 3, 2, 0, "max")
    return jnp.concatenate([b3, b7, bp], axis=-1)


def inception_e_fwd(P, pfx, x):
    b1 = conv_bn_relu(x, P[pfx + ".branch1x1"])
    b3 = conv_bn_relu(x, P[pfx + ".branch3x3_1"])
    b3a = conv_bn_relu(b3, P[pfx + ".branch3x3_2a"], padding=(0, 1))
    b3b = conv_bn_relu(b3, P[pfx + ".branch3x3_2b"], padding=(1, 0))
    b3 = jnp.concatenate([b3a, b3b], axis=-1)
    bd = conv_bn_relu(x, P[pfx + ".branch3x3dbl_1"])
    bd = conv_bn_relu(bd, P[pfx + ".branch3x3dbl_2"], padding=(1, 1))
    bda = conv_bn_relu(bd, P[pfx + ".branch3x3dbl_3a"], padding=(0, 1))
    bdb = conv_bn_relu(bd, P[pfx + ".branch3x3dbl_3b"], padding=(1, 0))
    bd = jnp.concatenate([bda, bdb], axis=-1)
    bp = pool2d(x, 3, 1, 1, "avg")
    bp = conv_bn_relu(bp, P[pfx + ".branch_pool"])
    return jnp.concatenate([b1, b3, bd, bp], axis=-1)


def inception_v3_forward(P, x_nchw):
    """Reference forward: iterate base._modules up to 'fc' (cut_at_pooling=False,
    has_embedding=False, norm=False, dropout<=0, num_classes=0 -> return backbone x)."""
    x = jnp.transpose(x_nchw, (0, 2, 3, 1)).astype(jnp.float32)  # NCHW -> NHWC
    x = conv_bn_relu(x, P["Conv2d_1a_3x3"], stride=2)
    x = conv_bn_relu(x, P["Conv2d_2a_3x3"])
    x = conv_bn_relu(x, P["Conv2d_2b_3x3"], padding=(1, 1))
    x = pool2d(x, 3, 2, 0, "max")          # maxpool1
    x = conv_bn_relu(x, P["Conv2d_3b_1x1"])
    x = conv_bn_relu(x, P["Conv2d_4a_3x3"])
    x = pool2d(x, 3, 2, 0, "max")          # maxpool2
    x = inception_a_fwd(P, "Mixed_5b", x)
    x = inception_a_fwd(P, "Mixed_5c", x)
    x = inception_a_fwd(P, "Mixed_5d", x)
    x = inception_b_fwd(P, x)              # Mixed_6a
    x = inception_c_fwd(P, "Mixed_6b", x)
    x = inception_c_fwd(P, "Mixed_6c", x)
    x = inception_c_fwd(P, "Mixed_6d", x)
    x = inception_c_fwd(P, "Mixed_6e", x)
    # TODO(synk): torchvision's AuxLogits module sits between Mixed_6e and Mixed_7a in
    # base._modules; applying it mid-stream (as the reference loop literally would)
    # collapses x to 2-D and breaks Mixed_7a, so it is skipped (standard inference).
    x = inception_d_fwd(P, x)              # Mixed_7a
    x = inception_e_fwd(P, "Mixed_7b", x)
    x = inception_e_fwd(P, "Mixed_7c", x)
    Nb, H, W, C = x.shape
    x = _gap_call(Nb, H, W, C)(x)          # avgpool (AdaptiveAvgPool2d((1,1)))
    # dropout module: identity at inference
    return jnp.transpose(x, (0, 3, 1, 2))  # back to NCHW: (N, 2048, 1, 1)


# ----------------------------------------------------------------------------------
# main
# ----------------------------------------------------------------------------------

if __name__ == "__main__":
    key = jax.random.PRNGKey(0)
    pkey, xkey = jax.random.split(key)
    params = build_params(pkey)
    # 75x75 is the minimum spatial size Inception-v3's stem / grid reductions admit.
    x = jax.random.normal(xkey, (2, 3, 75, 75), jnp.float32)  # NCHW, like PyTorch
    out = inception_v3_forward(params, x)
    out = jax.block_until_ready(out)
    assert out.shape == (2, 2048, 1, 1), out.shape
    assert bool(jnp.all(jnp.isfinite(out)))
    print("KERNEL_OK")
</pallas_src>

<mosaic_0001>
module attributes {stable_mosaic.version = 11 : i64} {
  func.func @_matmul_bn_relu_kernel(%arg0: i32, %arg1: memref<464x27xbf16, #tpu.memory_space<vmem>>, %arg2: memref<27x128xbf16, #tpu.memory_space<vmem>>, %arg3: memref<1x128xf32, #tpu.memory_space<vmem>>, %arg4: memref<1x128xf32, #tpu.memory_space<vmem>>, %arg5: memref<464x128xf32, #tpu.memory_space<vmem>>) attributes {dimension_semantics = [#tpu.dimension_semantics<parallel>], iteration_bounds = array<i64: 6>, scalar_prefetch = 0 : i64, scratch_operands = 0 : i64, tpu.core_type = #tpu.core_type<tc>, window_params = [{transform_indices = @transform_0, window_bounds = array<i64: 464, 27>}, {pipeline_mode = #tpu.pipeline_mode<synchronous>, transform_indices = @transform_1, window_bounds = array<i64: 27, 128>}, {pipeline_mode = #tpu.pipeline_mode<synchronous>, transform_indices = @transform_2, window_bounds = array<i64: 1, 128>}, {pipeline_mode = #tpu.pipeline_mode<synchronous>, transform_indices = @transform_3, window_bounds = array<i64: 1, 128>}, {transform_indices = @transform_4, window_bounds = array<i64: 464, 128>}]} {
    %c0 = arith.constant 0 : index
    %c0_0 = arith.constant 0 : index
    %0 = vector.load %arg1[%c0, %c0_0] : memref<464x27xbf16, #tpu.memory_space<vmem>>, vector<464x27xbf16>
    %c0_1 = arith.constant 0 : index
    %c0_2 = arith.constant 0 : index
    %1 = vector.load %arg2[%c0_1, %c0_2] : memref<27x128xbf16, #tpu.memory_space<vmem>>, vector<27x128xbf16>
    %cst = arith.constant dense<0.000000e+00> : vector<464x128xf32>
    %2 = tpu.matmul %0, %1, %cst {dimension_numbers = #tpu.dot_dimension_numbers<[1], [0], [0], [1], [0, 0, 1, 1], [], []>} : vector<464x27xbf16>, vector<27x128xbf16>, vector<464x128xf32> -> vector<464x128xf32>
    %c0_3 = arith.constant 0 : index
    %c0_4 = arith.constant 0 : index
    %3 = vector.load %arg3[%c0_3, %c0_4] : memref<1x128xf32, #tpu.memory_space<vmem>>, vector<1x128xf32>
    %4 = vector.broadcast %3 : vector<1x128xf32> to vector<464x128xf32>
    %5 = arith.mulf %2, %4 : vector<464x128xf32>
    %c0_5 = arith.constant 0 : index
    %c0_6 = arith.constant 0 : index
    %6 = vector.load %arg4[%c0_5, %c0_6] : memref<1x128xf32, #tpu.memory_space<vmem>>, vector<1x128xf32>
    %7 = vector.broadcast %6 : vector<1x128xf32> to vector<464x128xf32>
    %8 = arith.addf %5, %7 : vector<464x128xf32>
    %cst_7 = arith.constant 0.000000e+00 : f32
    %9 = vector.broadcast %cst_7 : f32 to vector<464x128xf32>
    %10 = arith.maximumf %8, %9 : vector<464x128xf32>
    %c0_8 = arith.constant 0 : index
    %c0_9 = arith.constant 0 : index
    %11 = vector.load %arg5[%c0_8, %c0_9] : memref<464x128xf32, #tpu.memory_space<vmem>>, vector<464x128xf32>
    tpu.vector_store %arg5[%c0_8, %c0_9], %10 {strides = array<i32>} : memref<464x128xf32, #tpu.memory_space<vmem>>, vector<464x128xf32>,
    return
  }
  func.func @transform_0(%arg0: i32) -> (i32, i32) {
    %c0_i32 = arith.constant 0 : i32
    %c0_i32_0 = arith.constant 0 : i32
    return %arg0, %c0_i32 : i32, i32
  }
  func.func @transform_1(%arg0: i32) -> (i32, i32) {
    %c0_i32 = arith.constant 0 : i32
    %c0_i32_0 = arith.constant 0 : i32
    %c0_i32_1 = arith.constant 0 : i32
    return %c0_i32, %c0_i32_0 : i32, i32
  }
  func.func @transform_2(%arg0: i32) -> (i32, i32) {
    %c0_i32 = arith.constant 0 : i32
    %c0_i32_0 = arith.constant 0 : i32
    %c0_i32_1 = arith.constant 0 : i32
    return %c0_i32, %c0_i32_0 : i32, i32
  }
  func.func @transform_3(%arg0: i32) -> (i32, i32) {
    %c0_i32 = arith.constant 0 : i32
    %c0_i32_0 = arith.constant 0 : i32
    %c0_i32_1 = arith.constant 0 : i32
    return %c0_i32, %c0_i32_0 : i32, i32
  }
  func.func @transform_4(%arg0: i32) -> (i32, i32) {
    %c0_i32 = arith.constant 0 : i32
    %c0_i32_0 = arith.constant 0 : i32
    return %arg0, %c0_i32 : i32, i32
  }
}

</mosaic_0001>

<bundles_post_ra>
// kernel: tpu_custom_call.1
= control target key start
LH: loop header
LB: loop body
LE: loop exit
PB: predicated region body
PF: predicated region fallthrough
CT: control target
= control target key end

     0   :  { %9 = vsyncpa [#allocation3], 0  ;;  %s2206_s0 = inlined_call_operand.vmem [shape: bf16[2784,27], index: 0, kind: input, shape index: {}]   ;;  %s2207_s1 = inlined_call_operand.hbm [shape: bf16[27,128], index: 1, kind: input, shape index: {}]   ;;  %s2208_s2 = inlined_call_operand.hbm [shape: f32[1,128], index: 2, kind: input, shape index: {}]   ;;  %s2209_s3 = inlined_call_operand.hbm [shape: f32[1,128], index: 3, kind: input, shape index: {}]   ;;  %s2210_s4 = inlined_call_operand.hbm [shape: f32[2784,128], index: 4, kind: output, shape index: {}]  }
   0x1   :  { %10 = vsyncpa [#allocation6], 0 }
   0x2   :  { %11 = vsyncpa [#allocation4], 0 }
   0x3   :  { %13 = vsyncpa [#allocation4 + $0x1], 0  ;;  %s1704_s15 = smov 0   ;;  %s1706_s16 = smov 0  }
   0x4   :  { %s1708_s17 = smov 0   ;;  %s1710_s18 = smov 0  }
   0x5 LB: > { %s1725_s19 = sadd.s32 4294967295, %s1666_s18   ;;  %s1171_s20 = sadd.s32 4294967294, %s1666_s18   ;;  %s1666_s18 = sphi %s1710_s18, %s2229_s18   ;;  %s1662_s17 = sphi %s1708_s17, %s2228_s17   ;;  %s1658_s16 = sphi %s1706_s16, %s2227_s16   ;;  %s1654_s15 = sphi %s1704_s15, %s2226_s15  }
   0x6   : > { %s1729_s21 = sadd.s32 1, %s1666_s18   ;;  %s115_s22 = sadd.s32 1, %s1662_s17 }
   0x7   : > { %s112_s23 = ssub.s32 %s1666_s18, %s1729_s21  ;;  %p125_p0 = scmp.ne.s32.totalorder %s1662_s17, %s1658_s16 }
   0x8   : > { %p113_p1 = scmp.eq.s32.totalorder %s112_s23, 0  ;;  %p126_p2 = scmp.eq.s32.totalorder %s1725_s19, 5 }
   0x9   : > { %p131_p3 = scmp.ne.s32.totalorder %s1658_s16, %s1654_s15  ;;  %p132_p4 = scmp.eq.s32.totalorder %s1171_s20, 5 }
   0xa   : > { %s1740_s24 = scalar_select %p113_p1, %s1662_s17, %s115_s22  }
   0xb   : > { %p1742_p5 = por %p126_p2, %p125_p0  ;;  %p1746_p6 = por %p132_p4, %p131_p3 }
   0xc   : > { %p1172_p7 = scmp.ge.s32.totalorder %s1666_s18, 1  ;;  %p139_p8 = scmp.lt.s32.totalorder %s1666_s18, 7 }
   0xd   : > { %s2214_s25 = scalar_select %p1742_p5, 1, 0 }
   0xe   : > { %s2215_s26 = scalar_select %p1746_p6, 1, 0 }
   0xf   : > { %p2211_p9 = scmp.eq.s32.totalorder %s1725_s19, 0  ;;  %p1753_p10 = pnand %p1172_p7, %p139_p8 }
  0x10   : > { %s1668_s28 = smov [#allocation5]   ;;  %s1669_s30 = smov [#allocation2]  }
  0x11   : > { %s2216_s27 = scalar_select %p1753_p10, 1, 0 }
  0x12   : > { %s165_s29 = sshll.u32 %s1668_s28, 4  ;;  %p1418_p11 = pneg %p1753_p10  ;;  %s166_s29 = int_to_ptr.vmem [resolvable:$true] %s165_s29 }
  0x13   : > { %s151_s5 = sshll.u32 %s1669_s30, 4  ;;  %s1670_s7 = smov [#allocation7]   ;;  %s1765_s5 = int_to_ptr.vmem [resolvable:$true] %s151_s5 }
  0x14   : > { %p1761_p12 = pnand %p2211_p9, %p1418_p11  ;;  %s1767_s8 = sshll.u32 %s1670_s7, 4  ;;  %s177_s8 = int_to_ptr.vmem [resolvable:$true] %s1767_s8 }
  0x15   : > { %s1512_s11 = scalar_lea.hbm %s2208_s2, 16 }
  0x16   : > { %p1513_p13 = scmp.ne.s32.totalorder %s2208_s2, %s1512_s11  ;;  %p1777_p0 = pneg %p1761_p12 }
  0x17   : > { %p1519_p3 = scmp.lt.u32.totalorder %s1512_s11, %s2208_s2 }
  0x18   : > { %p1515_p1 = pnand %p1777_p0, %p1513_p13 }
  0x1a   : > { %p1516_p2 = pneg %p1515_p1 }
  0x1c   : > { %p1521_p4 = pnand %p1519_p3, %p1516_p2 }
  0x1e   : > { %1524 = shalt.err (!%p1521_p4)
}
  0x1f   : > { %s1525_s23 = scalar_lea.vmem %s166_s29, 16  ;;  %s1532_s28 = scalar_lea.vmem %s166_s29, 32 }
  0x20   : > { %p1526_p7 = scmp.ne.s32.totalorder %s166_s29, %s1525_s23  ;;  %p1533_p9 = scmp.lt.s32.totalorder %s166_s29, %s166_s29 }
  0x21   : > { %p1534_p6 = scmp.lt.s32.totalorder %s1532_s28, %s1525_s23 }
  0x22   : > { %p1528_p8 = pnand %p1526_p7, %p1777_p0 }
  0x23   : > { %p1535_p5 = por %p1534_p6, %p1533_p9 }
  0x24   : > { %p1529_p11 = pneg %p1528_p8 }
  0x26   : > { %p1536_p10 = pnand %p1535_p5, %p1529_p11 }
  0x28   : > { %1539 = shalt.err (!%p1536_p10)
}
  0x29   : > { %1424 = dma.hbm_to_vmem [thread:$0]  (!%p1761_p12), %s2208_s2, 16, %s166_s29, [#allocation6]  }
  0x2a   : > { %s1540_s11 = scalar_lea.hbm %s2207_s1, 256 }
  0x2b   : > { %p1541_p13 = scmp.ne.s32.totalorder %s2207_s1, %s1540_s11  ;;  %p1547_p5 = scmp.lt.u32.totalorder %s1540_s11, %s2207_s1 }
  0x2d   : > { %p1543_p1 = pnand %p1541_p13, %p1777_p0 }
  0x2f   : > { %p1544_p6 = pneg %p1543_p1 }
  0x31   : > { %p1549_p9 = pnand %p1547_p5, %p1544_p6 }
  0x33   : > { %1552 = shalt.err (!%p1549_p9)
}
  0x34   : > { %s1553_s29 = scalar_lea.vmem %s1765_s5, 256  ;;  %p1561_p4 = scmp.lt.s32.totalorder %s1765_s5, %s1765_s5 }
  0x35   : > { %p1554_p10 = scmp.ne.s32.totalorder %s1765_s5, %s1553_s29  ;;  %p1562_p7 = scmp.lt.s32.totalorder %s1553_s29, %s1553_s29 }
  0x37   : > { %p1556_p2 = pnand %p1554_p10, %p1777_p0  ;;  %p1563_p8 = por %p1562_p7, %p1561_p4 }
  0x39   : > { %p1557_p3 = pneg %p1556_p2 }
  0x3b   : > { %p1564_p11 = pnand %p1563_p8, %p1557_p3 }
  0x3d   : > { %1567 = shalt.err (!%p1564_p11)
}
  0x3e   : > { %s1671_s23 = smov 64   ;;  %s1672_s28 = smov 4  }
  0x3f   : > { %1421 = dma.hbm_to_vmem [thread:$0]  (!%p1761_p12), %s2207_s1, 256, %s1765_s5, [#allocation3], %s1671_s23, %s1671_s23, %s1672_s28  }
  0x40   : > { %s1568_s11 = scalar_lea.hbm %s2209_s3, 16 }
  0x41   : > { %p1569_p13 = scmp.ne.s32.totalorder %s2209_s3, %s1568_s11  ;;  %p1575_p5 = scmp.lt.u32.totalorder %s1568_s11, %s2209_s3 }
  0x43   : > { %p1571_p1 = pnand %p1569_p13, %p1777_p0 }
  0x45   : > { %p1572_p6 = pneg %p1571_p1 }
  0x47   : > { %p1577_p9 = pnand %p1575_p5, %p1572_p6 }
  0x49   : > { %1580 = shalt.err (!%p1577_p9)
}
  0x4a   : > { %s1581_s29 = scalar_lea.vmem %s177_s8, 16  ;;  %s1588_s5 = scalar_lea.vmem %s177_s8, 32 }
  0x4b   : > { %p1582_p10 = scmp.ne.s32.totalorder %s177_s8, %s1581_s29  ;;  %p1589_p4 = scmp.lt.s32.totalorder %s177_s8, %s177_s8 }
  0x4c   : > { %p1590_p7 = scmp.lt.s32.totalorder %s1588_s5, %s1581_s29 }
  0x4d   : > { %p1584_p2 = pnand %p1582_p10, %p1777_p0 }
  0x4e   : > { %p1591_p8 = por %p1590_p7, %p1589_p4 }
  0x4f   : > { %p1585_p3 = pneg %p1584_p2 }
  0x51   : > { %p1592_p11 = pnand %p1591_p8, %p1585_p3 }
  0x53   : > { %1595 = shalt.err (!%p1592_p11)
}
  0x54   : > { %1427 = dma.hbm_to_vmem [thread:$0]  (!%p1761_p12), %s2209_s3, 16, %s177_s8, [#allocation6]  }
  0x55   : > { %p2219_p13 = scmp.ne.s32.totalorder %s2216_s27, 0 }
  0x56   : > { %p2220_p1 = scmp.eq.s32.totalorder (!%p2219_p13), %s1725_s19, 0 }
  0x57   : > { %198 = sbr.rel (%p2219_p13) target bundleno = 456 (0x1c8), region = 36 }
  0x5e   : > { %1641 = dma.done.wait (%p2220_p1), [#allocation3], 256   ;;  %p2221_p0 = pmov %p2220_p1 }
  0x60   : > { %1643 = vsyncadd (%p2221_p0), [#allocation3], 4294967040  ;;  %p2222_p6 = pmov %p2221_p0 }
  0x61   : > { %p2223_p5 = pmov %p2221_p0 }
  0x62   : > { %1645 = dma.done.wait (%p2222_p6), [#allocation6], 32  }
  0x63   : > { %1647 = vsyncadd (%p2223_p5), [#allocation6], 4294967264  ;;  %vm546_vm0 = vcmask 1044480   ;;  %v1673_v0 = vmov 0.0   ;;  %s232_s27 = smul.u32 58, %s1725_s19  ;;  %vm1674_vm1 = vmmov 0  }
  0x64   : > { %1279 = vmatprep.subr.bf16.mxu0 %v1673_v0  ;;  %1399 = vmatprep.subr.bf16.mxu1 %v1673_v0  ;;  %vm547_vm2 = vcmask 1045504   ;;  %v1675_v1 = vmov 65535   ;;  %v1481_v4 = vld [vmem:[#allocation2] sm:$0xff]   ;;  %v1482_v5 = vld [vmem:[#allocation2 + $0x8] sm:$0x3f]   ;;  %vm458_vm3 = vcmask 220160  }
  0x65   : > { %1283 = vmatprep.mubr.msk.bf16.mxu0 %vm1674_vm1, %v1673_v0  ;;  %1343 = vmatprep.mubr.msk.bf16.mxu1 %vm1674_vm1, %v1673_v0  ;;  %v548_v2 = vsel %vm546_vm0, 4294967295, %v1675_v1  ;;  %p233_p12 = scmp.lt.s32.totalorder %s232_s27, 347  ;;  %s229_s7 = sand.u32 1, %s1658_s16   ;;  %v1972_v36 = vld [vmem:[#allocation5] ss:$0 sm:$0xff] }
  0x66   : > { %v549_v3 = vsel %vm547_vm2, %v548_v2, 0  ;;  %1280 = vmatpush3.bf16.msra.mxu0 %v1481_v4  ;;  %1401 = vmatpush3.bf16.msra.mxu1 %v1481_v4  ;;  %s1403_s9 = smul.u32 464, %s229_s7  ;;  %v1976_v38 = vld [vmem:[#allocation7] ss:$0 sm:$0xff]  ;;  %p2224_p10 = scmp.ne.s32.totalorder %s2214_s25, 0 }
  0x67   : > { %s2231_s27 = smov (!%p233_p12, %s232_s27), 347  ;;  %1281 = vmatprep.subr.bf16.mxu0 %v1673_v0  ;;  %v551_v6 = vand.u32 %v1482_v5, %v549_v3  ;;  %1400 = vmatprep.subr.bf16.mxu1 %v1673_v0  ;;  %s1247_s11 = smul.u32 7424, %s1725_s19 }
  0x68   : > { %s1181_s6 = sshll.u32 %s2231_s27, 2  ;;  %s1986_s10 = scalar_lea.vmem [#allocation8], %s1403_s9 }
  0x69   : > { %s1855_s30 = scalar_lea.vmem %s2206_s0, %s1181_s6  ;;  %s1078_s12 = sshll.u32 %s1986_s10, 4  ;;  %s2159_s12 = int_to_ptr.vmem [resolvable:$true] %s1078_s12 }
  0x6a   : > { %v1483_v7 = vld [vmem:[%s1855_s30] sm:$0xff]   ;;  %v1484_v8 = vld [vmem:[%s1855_s30 + $0x78] sm:$0xff]   ;;  %1282 = vmatpush3.bf16.msra.mxu0 %v551_v6  ;;  %1402 = vmatpush3.bf16.msra.mxu1 %v551_v6  ;;  %v1485_v9 = vld [vmem:[%s1855_s30 + $0x8] sm:$0xff]   ;;  %s2157_s22 = scalar_lea.hbm %s2210_s4, %s1247_s11  ;;  %s2165_s19 = scalar_lea.sflag [#allocation4], %s229_s7 }
  0x6b   : > { %v1486_v10 = vld [vmem:[%s1855_s30 + $0x80] sm:$0xff]   ;;  %v1487_v11 = vld [vmem:[%s1855_s30 + $0x10] sm:$0xff]   ;;  %v1488_v12 = vld [vmem:[%s1855_s30 + $0x88] sm:$0xff]   ;;  %s1596_s29 = scalar_lea.vmem %s2159_s12, 7424  ;;  %s1676_s5 = smov [#allocation8]  }
  0x6c   : > { %v1489_v13 = vld [vmem:[%s1855_s30 + $0x18] sm:$0xff]   ;;  %v1490_v14 = vld [vmem:[%s1855_s30 + $0x90] sm:$0xff]   ;;  %v1491_v15 = vld [vmem:[%s1855_s30 + $0x20] sm:$0xff]   ;;  %p1597_p9 = scmp.ne.s32.totalorder %s2159_s12, %s1596_s29  ;;  %s1600_s23 = sshll.u32 %s1676_s5, 4  ;;  %s1601_s23 = int_to_ptr.vmem [resolvable:$false] %s1600_s23 }
  0x6d   : > { %1284 = vmatmul.mubr.msk.bf16.vlgmr.msra.gmra.mrb[0].mxu0 %vm458_vm3, %v1483_v7  ;;  %1344 = vmatmul.mubr.msk.bf16.vlgmr.msra.gmra.mrb[0].mxu1 %vm458_vm3, %v1484_v8  ;;  %v1492_v16 = vld [vmem:[%s1855_s30 + $0x98] sm:$0xff]   ;;  %v1493_v17 = vld [vmem:[%s1855_s30 + $0x28] sm:$0xff]   ;;  %v1494_v18 = vld [vmem:[%s1855_s30 + $0xa0] sm:$0xff]   ;;  %s1602_s28 = scalar_lea.vmem %s1601_s23, 14848  ;;  %p1603_p4 = scmp.lt.s32.totalorder %s2159_s12, %s1601_s23 }
  0x6e   : > { %1287 = vmatprep.mubr.msk.bf16.mxu0 %vm1674_vm1, %v1673_v0  ;;  %1347 = vmatprep.mubr.msk.bf16.mxu1 %vm1674_vm1, %v1673_v0  ;;  %v1495_v19 = vld [vmem:[%s1855_s30 + $0x30] sm:$0xff]   ;;  %v1496_v20 = vld [vmem:[%s1855_s30 + $0xa8] sm:$0xff]   ;;  %v1497_v21 = vld [vmem:[%s1855_s30 + $0x38] sm:$0xff]   ;;  %p1598_p2 = pnand %p1597_p9, %p2224_p10  ;;  %p1604_p7 = scmp.lt.s32.totalorder %s1602_s28, %s1596_s29 }
  0x6f   : > { %v1498_v22 = vld [vmem:[%s1855_s30 + $0xb0] sm:$0xff]   ;;  %v1499_v23 = vld [vmem:[%s1855_s30 + $0x40] sm:$0xff]   ;;  %v1500_v24 = vld [vmem:[%s1855_s30 + $0xb8] sm:$0xff]  }
  0x70   : > { %v1501_v25 = vld [vmem:[%s1855_s30 + $0x48] sm:$0xff]   ;;  %v1502_v26 = vld [vmem:[%s1855_s30 + $0xc0] sm:$0xff]   ;;  %v1503_v27 = vld [vmem:[%s1855_s30 + $0x50] sm:$0xff]   ;;  %p1599_p3 = pneg %p1598_p2  ;;  %p1605_p8 = por %p1604_p7, %p1603_p4 }
  0x71   : > { %v1504_v28 = vld [vmem:[%s1855_s30 + $0xc8] sm:$0xff]   ;;  %v1505_v29 = vld [vmem:[%s1855_s30 + $0x58] sm:$0xff]   ;;  %v1506_v30 = vld [vmem:[%s1855_s30 + $0xd0] sm:$0xff]  }
  0x72   : > { %v1507_v31 = vld [vmem:[%s1855_s30 + $0x60] sm:$0xff]   ;;  %v1508_v32 = vld [vmem:[%s1855_s30 + $0xd8] sm:$0xff]   ;;  %v1509_v33 = vld [vmem:[%s1855_s30 + $0x68] sm:$0xff]   ;;  %p1606_p11 = pnand %p1605_p8, %p1599_p3 }
  0x73   : > { %v1510_v34 = vld [vmem:[%s1855_s30 + $0xe0] sm:$0xff]   ;;  %v1511_v35 = vld [vmem:[%s1855_s30 + $0x70] sm:$0xff]  }
  0x75   : > { %1288 = vmatmul.mubr.msk.bf16.gmra.mrb[4].mxu0 %vm458_vm3, %v1485_v9  ;;  %1348 = vmatmul.mubr.msk.bf16.gmra.mrb[4].mxu1 %vm458_vm3, %v1486_v10 }
  0x76   : > { %1291 = vmatprep.mubr.msk.bf16.mxu0 %vm1674_vm1, %v1673_v0  ;;  %1351 = vmatprep.mubr.msk.bf16.mxu1 %vm1674_vm1, %v1673_v0 }
  0x7d   : > { %1292 = vmatmul.mubr.msk.bf16.gmra.mrb[8].mxu0 %vm458_vm3, %v1487_v11  ;;  %1352 = vmatmul.mubr.msk.bf16.gmra.mrb[8].mxu1 %vm458_vm3, %v1488_v12 }
  0x7e   : > { %1295 = vmatprep.mubr.msk.bf16.mxu0 %vm1674_vm1, %v1673_v0  ;;  %1355 = vmatprep.mubr.msk.bf16.mxu1 %vm1674_vm1, %v1673_v0 }
  0x85   : > { %1296 = vmatmul.mubr.msk.bf16.gmra.mrb[12].mxu0 %vm458_vm3, %v1489_v13  ;;  %1356 = vmatmul.mubr.msk.bf16.gmra.mrb[12].mxu1 %vm458_vm3, %v1490_v14 }
  0x86   : > { %1299 = vmatprep.mubr.msk.bf16.mxu0 %vm1674_vm1, %v1673_v0  ;;  %1359 = vmatprep.mubr.msk.bf16.mxu1 %vm1674_vm1, %v1673_v0 }
  0x8d   : > { %1300 = vmatmul.mubr.msk.bf16.gmra.mrb[16].mxu0 %vm458_vm3, %v1491_v15  ;;  %1360 = vmatmul.mubr.msk.bf16.gmra.mrb[16].mxu1 %vm458_vm3, %v1492_v16 }
  0x8e   : > { %1303 = vmatprep.mubr.msk.bf16.mxu0 %vm1674_vm1, %v1673_v0  ;;  %1363 = vmatprep.mubr.msk.bf16.mxu1 %vm1674_vm1, %v1673_v0 }
  0x95   : > { %1304 = vmatmul.mubr.msk.bf16.gmra.mrb[20].mxu0 %vm458_vm3, %v1493_v17  ;;  %1364 = vmatmul.mubr.msk.bf16.gmra.mrb[20].mxu1 %vm458_vm3, %v1494_v18 }
  0x96   : > { %1307 = vmatprep.mubr.msk.bf16.mxu0 %vm1674_vm1, %v1673_v0  ;;  %1367 = vmatprep.mubr.msk.bf16.mxu1 %vm1674_vm1, %v1673_v0 }
  0x9d   : > { %1308 = vmatmul.mubr.msk.bf16.gmra.mrb[24].mxu0 %vm458_vm3, %v1495_v19  ;;  %1368 = vmatmul.mubr.msk.bf16.gmra.mrb[24].mxu1 %vm458_vm3, %v1496_v20 }
  0x9e   : > { %1311 = vmatprep.mubr.msk.bf16.mxu0 %vm1674_vm1, %v1673_v0  ;;  %1371 = vmatprep.mubr.msk.bf16.mxu1 %vm1674_vm1, %v1673_v0 }
  0xa5   : > { %1312 = vmatmul.mubr.msk.bf16.gmra.mrb[28].mxu0 %vm458_vm3, %v1497_v21  ;;  %1372 = vmatmul.mubr.msk.bf16.gmra.mrb[28].mxu1 %vm458_vm3, %v1498_v22 }
  0xa6   : > { %1315 = vmatprep.mubr.msk.bf16.mxu0 %vm1674_vm1, %v1673_v0  ;;  %1375 = vmatprep.mubr.msk.bf16.mxu1 %vm1674_vm1, %v1673_v0 }
  0xad   : > { %1316 = vmatmul.mubr.msk.bf16.gmra.mrb[32].mxu0 %vm458_vm3, %v1499_v23  ;;  %1376 = vmatmul.mubr.msk.bf16.gmra.mrb[32].mxu1 %vm458_vm3, %v1500_v24 }
  0xae   : > { %1319 = vmatprep.mubr.msk.bf16.mxu0 %vm1674_vm1, %v1673_v0  ;;  %1379 = vmatprep.mubr.msk.bf16.mxu1 %vm1674_vm1, %v1673_v0 }
  0xb5   : > { %1320 = vmatmul.mubr.msk.bf16.gmra.mrb[36].mxu0 %vm458_vm3, %v1501_v25  ;;  %1380 = vmatmul.mubr.msk.bf16.gmra.mrb[36].mxu1 %vm458_vm3, %v1502_v26 }
  0xb6   : > { %1323 = vmatprep.mubr.msk.bf16.mxu0 %vm1674_vm1, %v1673_v0  ;;  %1383 = vmatprep.mubr.msk.bf16.mxu1 %vm1674_vm1, %v1673_v0 }
  0xbd   : > { %1324 = vmatmul.mubr.msk.bf16.gmra.mrb[40].mxu0 %vm458_vm3, %v1503_v27  ;;  %1384 = vmatmul.mubr.msk.bf16.gmra.mrb[40].mxu1 %vm458_vm3, %v1504_v28 }
  0xbe   : > { %1327 = vmatprep.mubr.msk.bf16.mxu0 %vm1674_vm1, %v1673_v0  ;;  %1387 = vmatprep.mubr.msk.bf16.mxu1 %vm1674_vm1, %v1673_v0 }
  0xc5   : > { %1328 = vmatmul.mubr.msk.bf16.gmra.mrb[44].mxu0 %vm458_vm3, %v1505_v29  ;;  %1388 = vmatmul.mubr.msk.bf16.gmra.mrb[44].mxu1 %vm458_vm3, %v1506_v30 }
  0xc6   : > { %1331 = vmatprep.mubr.msk.bf16.mxu0 %vm1674_vm1, %v1673_v0  ;;  %1391 = vmatprep.mubr.msk.bf16.mxu1 %vm1674_vm1, %v1673_v0 }
  0xcd   : > { %1332 = vmatmul.mubr.msk.bf16.gmra.mrb[48].mxu0 %vm458_vm3, %v1507_v31  ;;  %1392 = vmatmul.mubr.msk.bf16.gmra.mrb[48].mxu1 %vm458_vm3, %v1508_v32 }
  0xce   : > { %1335 = vmatprep.mubr.msk.bf16.mxu0 %vm1674_vm1, %v1673_v0  ;;  %1395 = vmatprep.mubr.msk.bf16.mxu1 %vm1674_vm1, %v1673_v0 }
  0xd5   : > { %1336 = vmatmul.mubr.msk.bf16.gmra.mrb[52].mxu0 %vm458_vm3, %v1509_v33  ;;  %1396 = vmatmul.mubr.msk.bf16.gmra.mrb[52].mxu1 %vm458_vm3, %v1510_v34 }
  0xd6   : > { %1339 = vmatprep.mubr.msk.bf16.mxu0 %vm1674_vm1, %v1673_v0 }
  0xdd   : > { %1340 = vmatmul.mubr.msk.bf16.gmra.mrb[56].mxu0 %vm458_vm3, %v1511_v35 }
 0x140   : > { %v587_v37 = vpop.f32.mrb[0].mxu0  ;;  %v707_v39 = vpop.f32.mrb[0].mxu1 }
 0x141   : > { %v825_v40 = vmul.f32 %v1972_v36, %v587_v37  ;;  %v1285_v41 = vpop.f32.mrb[1].mxu0  ;;  %v855_v42 = vmul.f32 %v1972_v36, %v707_v39  ;;  %v1345_v43 = vpop.f32.mrb[1].mxu1 }
 0x142   : > { %v590_v44 = vpop.f32.mrb[2].mxu0  ;;  %v710_v45 = vpop.f32.mrb[2].mxu1 }
 0x143   : > { %v890_v46 = vadd.f32 %v1976_v38, %v825_v40  ;;  %v826_v47 = vmul.f32 %v1972_v36, %v590_v44  ;;  %v1286_v48 = vpop.f32.mrb[3].mxu0  ;;  %v920_v49 = vadd.f32 %v1976_v38, %v855_v42  ;;  %v856_v50 = vmul.f32 %v1972_v36, %v710_v45  ;;  %v1346_v51 = vpop.f32.mrb[3].mxu1 }
 0x145   : > { %v948_v52 = vmax.f32 %v890_v46, 0.0  ;;  %v891_v53 = vadd.f32 %v1976_v38, %v826_v47  ;;  %v978_v54 = vmax.f32 %v920_v49, 0.0  ;;  %v921_v55 = vadd.f32 %v1976_v38, %v856_v50 }
 0x147   : > { %1006 = vst [vmem:[%s1986_s10] sm:$0xff] %v948_v52  ;;  %v949_v56 = vmax.f32 %v891_v53, 0.0  ;;  %1036 = vst [vmem:[%s1986_s10 + $0xf0] sm:$0xff] %v978_v54  ;;  %v979_v57 = vmax.f32 %v921_v55, 0.0 }
 0x148   : > { %v595_v58 = vpop.f32.mrb[4].mxu0  ;;  %v715_v59 = vpop.f32.mrb[4].mxu1 }
 0x149   : > { %1007 = vst [vmem:[%s1986_s10 + $0x8] sm:$0xff] %v949_v56  ;;  %1037 = vst [vmem:[%s1986_s10 + $0xf8] sm:$0xff] %v979_v57  ;;  %v827_v60 = vmul.f32 %v1972_v36, %v595_v58  ;;  %v1289_v61 = vpop.f32.mrb[5].mxu0  ;;  %v857_v62 = vmul.f32 %v1972_v36, %v715_v59  ;;  %v1349_v63 = vpop.f32.mrb[5].mxu1 }
 0x14a   : > { %v598_v0 = vpop.f32.mrb[6].mxu0  ;;  %v718_v1 = vpop.f32.mrb[6].mxu1 }
 0x14b   : > { %v892_v2 = vadd.f32 %v1976_v38, %v827_v60  ;;  %v828_v3 = vmul.f32 %v1972_v36, %v598_v0  ;;  %v1290_v4 = vpop.f32.mrb[7].mxu0  ;;  %v922_v5 = vadd.f32 %v1976_v38, %v857_v62  ;;  %v858_v6 = vmul.f32 %v1972_v36, %v718_v1  ;;  %v1350_v7 = vpop.f32.mrb[7].mxu1 }
 0x14d   : > { %v950_v8 = vmax.f32 %v892_v2, 0.0  ;;  %v893_v9 = vadd.f32 %v1976_v38, %v828_v3  ;;  %v980_v10 = vmax.f32 %v922_v5, 0.0  ;;  %v923_v11 = vadd.f32 %v1976_v38, %v858_v6 }
 0x14f   : > { %1008 = vst [vmem:[%s1986_s10 + $0x10] sm:$0xff] %v950_v8  ;;  %v951_v12 = vmax.f32 %v893_v9, 0.0  ;;  %1038 = vst [vmem:[%s1986_s10 + $0x100] sm:$0xff] %v980_v10  ;;  %v981_v13 = vmax.f32 %v923_v11, 0.0 }
 0x150   : > { %v603_v14 = vpop.f32.mrb[8].mxu0  ;;  %v723_v15 = vpop.f32.mrb[8].mxu1 }
 0x151   : > { %1009 = vst [vmem:[%s1986_s10 + $0x18] sm:$0xff] %v951_v12  ;;  %1039 = vst [vmem:[%s1986_s10 + $0x108] sm:$0xff] %v981_v13  ;;  %v829_v16 = vmul.f32 %v1972_v36, %v603_v14  ;;  %v1293_v17 = vpop.f32.mrb[9].mxu0  ;;  %v859_v18 = vmul.f32 %v1972_v36, %v723_v15  ;;  %v1353_v19 = vpop.f32.mrb[9].mxu1 }
 0x152   : > { %v606_v20 = vpop.f32.mrb[10].mxu0  ;;  %v726_v21 = vpop.f32.mrb[10].mxu1 }
 0x153   : > { %v894_v22 = vadd.f32 %v1976_v38, %v829_v16  ;;  %v830_v23 = vmul.f32 %v1972_v36, %v606_v20  ;;  %v1294_v24 = vpop.f32.mrb[11].mxu0  ;;  %v924_v25 = vadd.f32 %v1976_v38, %v859_v18  ;;  %v860_v26 = vmul.f32 %v1972_v36, %v726_v21  ;;  %v1354_v27 = vpop.f32.mrb[11].mxu1 }
 0x155   : > { %v952_v28 = vmax.f32 %v894_v22, 0.0  ;;  %v895_v29 = vadd.f32 %v1976_v38, %v830_v23  ;;  %v982_v30 = vmax.f32 %v924_v25, 0.0  ;;  %v925_v31 = vadd.f32 %v1976_v38, %v860_v26 }
 0x157   : > { %1010 = vst [vmem:[%s1986_s10 + $0x20] sm:$0xff] %v952_v28  ;;  %v953_v32 = vmax.f32 %v895_v29, 0.0  ;;  %1040 = vst [vmem:[%s1986_s10 + $0x110] sm:$0xff] %v982_v30  ;;  %v983_v33 = vmax.f32 %v925_v31, 0.0 }
 0x158   : > { %v611_v34 = vpop.f32.mrb[12].mxu0  ;;  %v731_v35 = vpop.f32.mrb[12].mxu1 }
 0x159   : > { %1011 = vst [vmem:[%s1986_s10 + $0x28] sm:$0xff] %v953_v32  ;;  %1041 = vst [vmem:[%s1986_s10 + $0x118] sm:$0xff] %v983_v33  ;;  %v831_v37 = vmul.f32 %v1972_v36, %v611_v34  ;;  %v1297_v39 = vpop.f32.mrb[13].mxu0  ;;  %v861_v40 = vmul.f32 %v1972_v36, %v731_v35  ;;  %v1357_v41 = vpop.f32.mrb[13].mxu1 }
 0x15a   : > { %v614_v42 = vpop.f32.mrb[14].mxu0  ;;  %v734_v43 = vpop.f32.mrb[14].mxu1 }
 0x15b   : > { %v896_v44 = vadd.f32 %v1976_v38, %v831_v37  ;;  %v832_v45 = vmul.f32 %v1972_v36, %v614_v42  ;;  %v1298_v46 = vpop.f32.mrb[15].mxu0  ;;  %v926_v47 = vadd.f32 %v1976_v38, %v861_v40  ;;  %v862_v48 = vmul.f32 %v1972_v36, %v734_v43  ;;  %v1358_v49 = vpop.f32.mrb[15].mxu1 }
 0x15d   : > { %v954_v50 = vmax.f32 %v896_v44, 0.0  ;;  %v897_v51 = vadd.f32 %v1976_v38, %v832_v45  ;;  %v984_v52 = vmax.f32 %v926_v47, 0.0  ;;  %v927_v53 = vadd.f32 %v1976_v38, %v862_v48 }
 0x15f   : > { %1012 = vst [vmem:[%s1986_s10 + $0x30] sm:$0xff] %v954_v50  ;;  %v955_v54 = vmax.f32 %v897_v51, 0.0  ;;  %1042 = vst [vmem:[%s1986_s10 + $0x120] sm:$0xff] %v984_v52  ;;  %v985_v55 = vmax.f32 %v927_v53, 0.0 }
 0x160   : > { %v619_v56 = vpop.f32.mrb[16].mxu0  ;;  %v739_v57 = vpop.f32.mrb[16].mxu1 }
 0x161   : > { %1013 = vst [vmem:[%s1986_s10 + $0x38] sm:$0xff] %v955_v54  ;;  %1043 = vst [vmem:[%s1986_s10 + $0x128] sm:$0xff] %v985_v55  ;;  %v833_v58 = vmul.f32 %v1972_v36, %v619_v56  ;;  %v1301_v59 = vpop.f32.mrb[17].mxu0  ;;  %v863_v60 = vmul.f32 %v1972_v36, %v739_v57  ;;  %v1361_v61 = vpop.f32.mrb[17].mxu1 }
 0x162   : > { %v622_v62 = vpop.f32.mrb[18].mxu0  ;;  %v742_v63 = vpop.f32.mrb[18].mxu1 }
 0x163   : > { %v898_v0 = vadd.f32 %v1976_v38, %v833_v58  ;;  %v834_v1 = vmul.f32 %v1972_v36, %v622_v62  ;;  %v1302_v2 = vpop.f32.mrb[19].mxu0  ;;  %v928_v3 = vadd.f32 %v1976_v38, %v863_v60  ;;  %v864_v4 = vmul.f32 %v1972_v36, %v742_v63  ;;  %v1362_v5 = vpop.f32.mrb[19].mxu1 }
 0x165   : > { %v956_v6 = vmax.f32 %v898_v0, 0.0  ;;  %v899_v7 = vadd.f32 %v1976_v38, %v834_v1  ;;  %v986_v8 = vmax.f32 %v928_v3, 0.0  ;;  %v929_v9 = vadd.f32 %v1976_v38, %v864_v4 }
 0x167   : > { %1014 = vst [vmem:[%s1986_s10 + $0x40] sm:$0xff] %v956_v6  ;;  %v957_v10 = vmax.f32 %v899_v7, 0.0  ;;  %1044 = vst [vmem:[%s1986_s10 + $0x130] sm:$0xff] %v986_v8  ;;  %v987_v11 = vmax.f32 %v929_v9, 0.0 }
 0x168   : > { %v627_v12 = vpop.f32.mrb[20].mxu0  ;;  %v747_v13 = vpop.f32.mrb[20].mxu1 }
 0x169   : > { %1015 = vst [vmem:[%s1986_s10 + $0x48] sm:$0xff] %v957_v10  ;;  %1045 = vst [vmem:[%s1986_s10 + $0x138] sm:$0xff] %v987_v11  ;;  %v835_v14 = vmul.f32 %v1972_v36, %v627_v12  ;;  %v1305_v15 = vpop.f32.mrb[21].mxu0  ;;  %v865_v16 = vmul.f32 %v1972_v36, %v747_v13  ;;  %v1365_v17 = vpop.f32.mrb[21].mxu1 }
 0x16a   : > { %v630_v18 = vpop.f32.mrb[22].mxu0  ;;  %v750_v19 = vpop.f32.mrb[22].mxu1 }
 0x16b   : > { %v900_v20 = vadd.f32 %v1976_v38, %v835_v14  ;;  %v836_v21 = vmul.f32 %v1972_v36, %v630_v18  ;;  %v1306_v22 = vpop.f32.mrb[23].mxu0  ;;  %v930_v23 = vadd.f32 %v1976_v38, %v865_v16  ;;  %v866_v24 = vmul.f32 %v1972_v36, %v750_v19  ;;  %v1366_v25 = vpop.f32.mrb[23].mxu1 }
 0x16d   : > { %v958_v26 = vmax.f32 %v900_v20, 0.0  ;;  %v901_v27 = vadd.f32 %v1976_v38, %v836_v21  ;;  %v988_v28 = vmax.f32 %v930_v23, 0.0  ;;  %v931_v29 = vadd.f32 %v1976_v38, %v866_v24 }
 0x16f   : > { %1016 = vst [vmem:[%s1986_s10 + $0x50] sm:$0xff] %v958_v26  ;;  %v959_v30 = vmax.f32 %v901_v27, 0.0  ;;  %1046 = vst [vmem:[%s1986_s10 + $0x140] sm:$0xff] %v988_v28  ;;  %v989_v31 = vmax.f32 %v931_v29, 0.0 }
 0x170   : > { %v635_v32 = vpop.f32.mrb[24].mxu0  ;;  %v755_v33 = vpop.f32.mrb[24].mxu1 }
 0x171   : > { %1017 = vst [vmem:[%s1986_s10 + $0x58] sm:$0xff] %v959_v30  ;;  %1047 = vst [vmem:[%s1986_s10 + $0x148] sm:$0xff] %v989_v31  ;;  %v837_v34 = vmul.f32 %v1972_v36, %v635_v32  ;;  %v1309_v35 = vpop.f32.mrb[25].mxu0  ;;  %v867_v37 = vmul.f32 %v1972_v36, %v755_v33  ;;  %v1369_v39 = vpop.f32.mrb[25].mxu1 }
 0x172   : > { %v638_v40 = vpop.f32.mrb[26].mxu0  ;;  %v758_v41 = vpop.f32.mrb[26].mxu1 }
 0x173   : > { %v902_v42 = vadd.f32 %v1976_v38, %v837_v34  ;;  %v838_v43 = vmul.f32 %v1972_v36, %v638_v40  ;;  %v1310_v44 = vpop.f32.mrb[27].mxu0  ;;  %v932_v45 = vadd.f32 %v1976_v38, %v867_v37  ;;  %v868_v46 = vmul.f32 %v1972_v36, %v758_v41  ;;  %v1370_v47 = vpop.f32.mrb[27].mxu1 }
 0x175   : > { %v960_v48 = vmax.f32 %v902_v42, 0.0  ;;  %v903_v49 = vadd.f32 %v1976_v38, %v838_v43  ;;  %v990_v50 = vmax.f32 %v932_v45, 0.0  ;;  %v933_v51 = vadd.f32 %v1976_v38, %v868_v46 }
 0x177   : > { %1018 = vst [vmem:[%s1986_s10 + $0x60] sm:$0xff] %v960_v48  ;;  %v961_v52 = vmax.f32 %v903_v49, 0.0  ;;  %1048 = vst [vmem:[%s1986_s10 + $0x150] sm:$0xff] %v990_v50  ;;  %v991_v53 = vmax.f32 %v933_v51, 0.0 }
 0x178   : > { %v643_v54 = vpop.f32.mrb[28].mxu0  ;;  %v763_v55 = vpop.f32.mrb[28].mxu1 }
 0x179   : > { %1019 = vst [vmem:[%s1986_s10 + $0x68] sm:$0xff] %v961_v52  ;;  %1049 = vst [vmem:[%s1986_s10 + $0x158] sm:$0xff] %v991_v53  ;;  %v839_v56 = vmul.f32 %v1972_v36, %v643_v54  ;;  %v1313_v57 = vpop.f32.mrb[29].mxu0  ;;  %v869_v58 = vmul.f32 %v1972_v36, %v763_v55  ;;  %v1373_v59 = vpop.f32.mrb[29].mxu1 }
 0x17a   : > { %v646_v60 = vpop.f32.mrb[30].mxu0  ;;  %v766_v61 = vpop.f32.mrb[30].mxu1 }
 0x17b   : > { %v904_v62 = vadd.f32 %v1976_v38, %v839_v56  ;;  %v840_v63 = vmul.f32 %v1972_v36, %v646_v60  ;;  %v1314_v0 = vpop.f32.mrb[31].mxu0  ;;  %v934_v1 = vadd.f32 %v1976_v38, %v869_v58  ;;  %v870_v2 = vmul.f32 %v1972_v36, %v766_v61  ;;  %v1374_v3 = vpop.f32.mrb[31].mxu1 }
 0x17d   : > { %v962_v4 = vmax.f32 %v904_v62, 0.0  ;;  %v905_v5 = vadd.f32 %v1976_v38, %v840_v63  ;;  %v992_v6 = vmax.f32 %v934_v1, 0.0  ;;  %v935_v7 = vadd.f32 %v1976_v38, %v870_v2 }
 0x17f   : > { %1020 = vst [vmem:[%s1986_s10 + $0x70] sm:$0xff] %v962_v4  ;;  %v963_v8 = vmax.f32 %v905_v5, 0.0  ;;  %1050 = vst [vmem:[%s1986_s10 + $0x160] sm:$0xff] %v992_v6  ;;  %v993_v9 = vmax.f32 %v935_v7, 0.0 }
 0x180   : > { %v651_v10 = vpop.f32.mrb[32].mxu0  ;;  %v771_v11 = vpop.f32.mrb[32].mxu1 }
 0x181   : > { %1021 = vst [vmem:[%s1986_s10 + $0x78] sm:$0xff] %v963_v8  ;;  %1051 = vst [vmem:[%s1986_s10 + $0x168] sm:$0xff] %v993_v9  ;;  %v841_v12 = vmul.f32 %v1972_v36, %v651_v10  ;;  %v1317_v13 = vpop.f32.mrb[33].mxu0  ;;  %v871_v14 = vmul.f32 %v1972_v36, %v771_v11  ;;  %v1377_v15 = vpop.f32.mrb[33].mxu1 }
 0x182   : > { %v654_v16 = vpop.f32.mrb[34].mxu0  ;;  %v774_v17 = vpop.f32.mrb[34].mxu1 }
 0x183   : > { %v906_v18 = vadd.f32 %v1976_v38, %v841_v12  ;;  %v842_v19 = vmul.f32 %v1972_v36, %v654_v16  ;;  %v1318_v20 = vpop.f32.mrb[35].mxu0  ;;  %v936_v21 = vadd.f32 %v1976_v38, %v871_v14  ;;  %v872_v22 = vmul.f32 %v1972_v36, %v774_v17  ;;  %v1378_v23 = vpop.f32.mrb[35].mxu1 }
 0x185   : > { %v964_v24 = vmax.f32 %v906_v18, 0.0  ;;  %v907_v25 = vadd.f32 %v1976_v38, %v842_v19  ;;  %v994_v26 = vmax.f32 %v936_v21, 0.0  ;;  %v937_v27 = vadd.f32 %v1976_v38, %v872_v22 }
 0x187   : > { %1022 = vst [vmem:[%s1986_s10 + $0x80] sm:$0xff] %v964_v24  ;;  %v965_v28 = vmax.f32 %v907_v25, 0.0  ;;  %1052 = vst [vmem:[%s1986_s10 + $0x170] sm:$0xff] %v994_v26  ;;  %v995_v29 = vmax.f32 %v937_v27, 0.0 }
 0x188   : > { %v659_v30 = vpop.f32.mrb[36].mxu0  ;;  %v779_v31 = vpop.f32.mrb[36].mxu1 }
 0x189   : > { %1023 = vst [vmem:[%s1986_s10 + $0x88] sm:$0xff] %v965_v28  ;;  %1053 = vst [vmem:[%s1986_s10 + $0x178] sm:$0xff] %v995_v29  ;;  %v843_v32 = vmul.f32 %v1972_v36, %v659_v30  ;;  %v1321_v33 = vpop.f32.mrb[37].mxu0  ;;  %v873_v34 = vmul.f32 %v1972_v36, %v779_v31  ;;  %v1381_v35 = vpop.f32.mrb[37].mxu1 }
 0x18a   : > { %v662_v37 = vpop.f32.mrb[38].mxu0  ;;  %v782_v39 = vpop.f32.mrb[38].mxu1 }
 0x18b   : > { %v908_v40 = vadd.f32 %v1976_v38, %v843_v32  ;;  %v844_v41 = vmul.f32 %v1972_v36, %v662_v37  ;;  %v1322_v42 = vpop.f32.mrb[39].mxu0  ;;  %v938_v43 = vadd.f32 %v1976_v38, %v873_v34  ;;  %v874_v44 = vmul.f32 %v1972_v36, %v782_v39  ;;  %v1382_v45 = vpop.f32.mrb[39].mxu1 }
 0x18d   : > { %v966_v46 = vmax.f32 %v908_v40, 0.0  ;;  %v909_v47 = vadd.f32 %v1976_v38, %v844_v41  ;;  %v996_v48 = vmax.f32 %v938_v43, 0.0  ;;  %v939_v49 = vadd.f32 %v1976_v38, %v874_v44 }
 0x18f   : > { %1024 = vst [vmem:[%s1986_s10 + $0x90] sm:$0xff] %v966_v46  ;;  %v967_v50 = vmax.f32 %v909_v47, 0.0  ;;  %1054 = vst [vmem:[%s1986_s10 + $0x180] sm:$0xff] %v996_v48  ;;  %v997_v51 = vmax.f32 %v939_v49, 0.0 }
 0x190   : > { %v667_v52 = vpop.f32.mrb[40].mxu0  ;;  %v787_v53 = vpop.f32.mrb[40].mxu1 }
 0x191   : > { %1025 = vst [vmem:[%s1986_s10 + $0x98] sm:$0xff] %v967_v50  ;;  %1055 = vst [vmem:[%s1986_s10 + $0x188] sm:$0xff] %v997_v51  ;;  %v845_v54 = vmul.f32 %v1972_v36, %v667_v52  ;;  %v1325_v55 = vpop.f32.mrb[41].mxu0  ;;  %v875_v56 = vmul.f32 %v1972_v36, %v787_v53  ;;  %v1385_v57 = vpop.f32.mrb[41].mxu1 }
 0x192   : > { %v670_v58 = vpop.f32.mrb[42].mxu0  ;;  %v790_v59 = vpop.f32.mrb[42].mxu1 }
 0x193   : > { %v910_v60 = vadd.f32 %v1976_v38, %v845_v54  ;;  %v846_v61 = vmul.f32 %v1972_v36, %v670_v58  ;;  %v1326_v62 = vpop.f32.mrb[43].mxu0  ;;  %v940_v63 = vadd.f32 %v1976_v38, %v875_v56  ;;  %v876_v0 = vmul.f32 %v1972_v36, %v790_v59  ;;  %v1386_v1 = vpop.f32.mrb[43].mxu1 }
 0x195   : > { %v968_v2 = vmax.f32 %v910_v60, 0.0  ;;  %v911_v3 = vadd.f32 %v1976_v38, %v846_v61  ;;  %v998_v4 = vmax.f32 %v940_v63, 0.0  ;;  %v941_v5 = vadd.f32 %v1976_v38, %v876_v0 }
 0x197   : > { %1026 = vst [vmem:[%s1986_s10 + $0xa0] sm:$0xff] %v968_v2  ;;  %v969_v6 = vmax.f32 %v911_v3, 0.0  ;;  %1056 = vst [vmem:[%s1986_s10 + $0x190] sm:$0xff] %v998_v4  ;;  %v999_v7 = vmax.f32 %v941_v5, 0.0 }
 0x198   : > { %v675_v8 = vpop.f32.mrb[44].mxu0  ;;  %v795_v9 = vpop.f32.mrb[44].mxu1 }
 0x199   : > { %1027 = vst [vmem:[%s1986_s10 + $0xa8] sm:$0xff] %v969_v6  ;;  %1057 = vst [vmem:[%s1986_s10 + $0x198] sm:$0xff] %v999_v7  ;;  %v847_v10 = vmul.f32 %v1972_v36, %v675_v8  ;;  %v1329_v11 = vpop.f32.mrb[45].mxu0  ;;  %v877_v12 = vmul.f32 %v1972_v36, %v795_v9  ;;  %v1389_v13 = vpop.f32.mrb[45].mxu1 }
 0x19a   : > { %v678_v14 = vpop.f32.mrb[46].mxu0  ;;  %v798_v15 = vpop.f32.mrb[46].mxu1 }
 0x19b   : > { %v912_v16 = vadd.f32 %v1976_v38, %v847_v10  ;;  %v848_v17 = vmul.f32 %v1972_v36, %v678_v14  ;;  %v1330_v18 = vpop.f32.mrb[47].mxu0  ;;  %v942_v19 = vadd.f32 %v1976_v38, %v877_v12  ;;  %v878_v20 = vmul.f32 %v1972_v36, %v798_v15  ;;  %v1390_v21 = vpop.f32.mrb[47].mxu1 }
 0x19d   : > { %v970_v22 = vmax.f32 %v912_v16, 0.0  ;;  %v913_v23 = vadd.f32 %v1976_v38, %v848_v17  ;;  %v1000_v24 = vmax.f32 %v942_v19, 0.0  ;;  %v943_v25 = vadd.f32 %v1976_v38, %v878_v20 }
 0x19f   : > { %1028 = vst [vmem:[%s1986_s10 + $0xb0] sm:$0xff] %v970_v22  ;;  %v971_v26 = vmax.f32 %v913_v23, 0.0  ;;  %1058 = vst [vmem:[%s1986_s10 + $0x1a0] sm:$0xff] %v1000_v24  ;;  %v1001_v27 = vmax.f32 %v943_v25, 0.0 }
 0x1a0   : > { %v683_v28 = vpop.f32.mrb[48].mxu0  ;;  %v803_v29 = vpop.f32.mrb[48].mxu1 }
 0x1a1   : > { %1029 = vst [vmem:[%s1986_s10 + $0xb8] sm:$0xff] %v971_v26  ;;  %1059 = vst [vmem:[%s1986_s10 + $0x1a8] sm:$0xff] %v1001_v27  ;;  %v849_v30 = vmul.f32 %v1972_v36, %v683_v28  ;;  %v1333_v31 = vpop.f32.mrb[49].mxu0  ;;  %v879_v32 = vmul.f32 %v1972_v36, %v803_v29  ;;  %v1393_v33 = vpop.f32.mrb[49].mxu1 }
 0x1a2   : > { %v686_v34 = vpop.f32.mrb[50].mxu0  ;;  %v806_v35 = vpop.f32.mrb[50].mxu1 }
 0x1a3   : > { %v914_v37 = vadd.f32 %v1976_v38, %v849_v30  ;;  %v850_v39 = vmul.f32 %v1972_v36, %v686_v34  ;;  %v1334_v40 = vpop.f32.mrb[51].mxu0  ;;  %v944_v41 = vadd.f32 %v1976_v38, %v879_v32  ;;  %v880_v42 = vmul.f32 %v1972_v36, %v806_v35  ;;  %v1394_v43 = vpop.f32.mrb[51].mxu1 }
 0x1a5   : > { %v972_v44 = vmax.f32 %v914_v37, 0.0  ;;  %v915_v45 = vadd.f32 %v1976_v38, %v850_v39  ;;  %v1002_v46 = vmax.f32 %v944_v41, 0.0  ;;  %v945_v47 = vadd.f32 %v1976_v38, %v880_v42 }
 0x1a7   : > { %1030 = vst [vmem:[%s1986_s10 + $0xc0] sm:$0xff] %v972_v44  ;;  %v973_v48 = vmax.f32 %v915_v45, 0.0  ;;  %1060 = vst [vmem:[%s1986_s10 + $0x1b0] sm:$0xff] %v1002_v46  ;;  %v1003_v49 = vmax.f32 %v945_v47, 0.0 }
 0x1a8   : > { %v691_v50 = vpop.f32.mrb[52].mxu0  ;;  %v811_v51 = vpop.f32.mrb[52].mxu1 }
 0x1a9   : > { %1031 = vst [vmem:[%s1986_s10 + $0xc8] sm:$0xff] %v973_v48  ;;  %1061 = vst [vmem:[%s1986_s10 + $0x1b8] sm:$0xff] %v1003_v49  ;;  %v851_v52 = vmul.f32 %v1972_v36, %v691_v50  ;;  %v1337_v53 = vpop.f32.mrb[53].mxu0  ;;  %v881_v54 = vmul.f32 %v1972_v36, %v811_v51  ;;  %v1397_v55 = vpop.f32.mrb[53].mxu1 }
 0x1aa   : > { %v694_v56 = vpop.f32.mrb[54].mxu0  ;;  %v814_v57 = vpop.f32.mrb[54].mxu1 }
 0x1ab   : > { %v916_v58 = vadd.f32 %v1976_v38, %v851_v52  ;;  %v852_v59 = vmul.f32 %v1972_v36, %v694_v56  ;;  %v1338_v60 = vpop.f32.mrb[55].mxu0  ;;  %v946_v61 = vadd.f32 %v1976_v38, %v881_v54  ;;  %v882_v62 = vmul.f32 %v1972_v36, %v814_v57  ;;  %v1398_v63 = vpop.f32.mrb[55].mxu1 }
 0x1ad   : > { %v974_v0 = vmax.f32 %v916_v58, 0.0  ;;  %v917_v1 = vadd.f32 %v1976_v38, %v852_v59  ;;  %v1004_v2 = vmax.f32 %v946_v61, 0.0  ;;  %v947_v3 = vadd.f32 %v1976_v38, %v882_v62 }
 0x1af   : > { %1032 = vst [vmem:[%s1986_s10 + $0xd0] sm:$0xff] %v974_v0  ;;  %v975_v4 = vmax.f32 %v917_v1, 0.0  ;;  %1062 = vst [vmem:[%s1986_s10 + $0x1c0] sm:$0xff] %v1004_v2  ;;  %v1005_v5 = vmax.f32 %v947_v3, 0.0 }
 0x1b0   : > { %v699_v6 = vpop.f32.mrb[56].mxu0 }
 0x1b1   : > { %1033 = vst [vmem:[%s1986_s10 + $0xd8] sm:$0xff] %v975_v4  ;;  %1063 = vst [vmem:[%s1986_s10 + $0x1c8] sm:$0xff] %v1005_v5  ;;  %v853_v7 = vmul.f32 %v1972_v36, %v699_v6  ;;  %v1341_v8 = vpop.f32.mrb[57].mxu0 }
 0x1b2   : > { %v702_v9 = vpop.f32.mrb[58].mxu0 }
 0x1b3   : > { %v918_v10 = vadd.f32 %v1976_v38, %v853_v7  ;;  %v854_v11 = vmul.f32 %v1972_v36, %v702_v9  ;;  %v1342_v12 = vpop.f32.mrb[59].mxu0 }
 0x1b5   : > { %v976_v13 = vmax.f32 %v918_v10, 0.0  ;;  %v919_v14 = vadd.f32 %v1976_v38, %v854_v11 }
 0x1b7   : > { %1034 = vst [vmem:[%s1986_s10 + $0xe0] sm:$0xff] %v976_v13  ;;  %v977_v15 = vmax.f32 %v919_v14, 0.0 }
 0x1b9   : > { %1035 = vst [vmem:[%s1986_s10 + $0xe8] sm:$0xff] %v977_v15 }
 0x1ba   : > { %1609 = shalt.err (!%p1606_p11)
}
 0x1bb   : > { %s1610_s27 = scalar_lea.hbm %s2157_s22, 7424  ;;  %s1614_s14 = scalar_lea.hbm %s2210_s4, 44544 }
 0x1bc   : > { %p1611_p13 = scmp.ne.s32.totalorder %s2157_s22, %s1610_s27  ;;  %p1615_p6 = scmp.lt.u32.totalorder %s2157_s22, %s2210_s4 }
 0x1bd   : > { %p1616_p5 = scmp.lt.u32.totalorder %s1614_s14, %s1610_s27  ;;  %p1618_p9 = scmp.lt.u32.totalorder %s1610_s27, %s2157_s22 }
 0x1be   : > { %p1612_p1 = pnand %p1611_p13, %p2224_p10 }
 0x1bf   : > { %p1617_p12 = por %p1616_p5, %p1615_p6 }
 0x1c0   : > { %p1613_p0 = pneg %p1612_p1 }
 0x1c1   : > { %p1619_p2 = por %p1618_p9, %p1617_p12 }
 0x1c3   : > { %p1620_p3 = pnand %p1619_p2, %p1613_p0 }
 0x1c5   : > { %1623 = shalt.err (!%p1620_p3)
}
 0x1c6   : > { %s1677_s9 = smov 128   ;;  %s1678_s10 = smov 8  }
 0x1c7   : > { %1416 = dma.vmem_to_hbm [thread:$0]  (%p2224_p10), %s2159_s12, 7424, %s2157_s22, %s2165_s19, %s1677_s9, %s1677_s9, %s1678_s10  }
 0x1c8 PF: > { %p1438_p4 = scmp.ge.s32.totalorder %s1666_s18, 2  ;;  %s1093_s11 = sand.u32 1, %s1654_s15  }
 0x1c9   : > { %p2225_p7 = scmp.ne.s32.totalorder %s2215_s26, 0  ;;  %s1094_s13 = scalar_lea.sflag [#allocation4], %s1093_s11 }
 0x1cb   : > { %p1429_p8 = pnand %p1438_p4, %p2225_p7 }
 0x1cd   : > { %1649 = dma.done.wait (!%p1429_p8), %s1094_s13, 7424  }
 0x1ce   : > { %1651 = vsyncadd (!%p1429_p8), %s1094_s13, 4294959872  ;;  %p16_p11 = scmp.ge.s32.totalorder %s1729_s21, 8   ;;  %s2226_s15 = smov %s1658_s16 }
 0x1cf   : > { %s2227_s16 = smov %s1662_s17  ;;  %s2228_s17 = smov %s1740_s24 }
 0x1d0   : > { %s2229_s18 = smov %s1729_s21  ;;  %18 = sbr.rel (!%p16_p11) target bundleno = 5 (0x5), region = 84 }
 0x1d7   :  { %1099 = vsyncpa [#allocation3], 1 }
 0x1d8   :  { %1101 = vsyncpa [#allocation3 + $0x1], 1 }
 0x1d9   :  { %1102 = vsyncpa [#allocation6], 1 }
 0x1da   :  { %1103 = vsyncpa [#allocation4], 1 }
 0x1db   :  { %1105 = vsyncpa [#allocation4 + $0x1], 1 }

</bundles_post_ra>
